<compile_context>
chip_gen: v6e
topology: v6e:2x2x1
jax: 0.10.0
libtpu: 0.0.40
codegen_flags: <defaults>
</compile_context>

<pallas_src>
import functools

import jax
import jax.numpy as jnp
from jax.experimental import pallas as pl
from jax.experimental.pallas import tpu as pltpu


def _round_up(a, b):
    return (a + b - 1) // b * b


def _geometry(m, d_in, units):
    """Pick the M-tile size / grid geometry from the device VMEM budget."""
    try:
        vmem_bytes = int(pltpu.get_tpu_info().vmem_capacity_bytes)
    except Exception:  # interpret mode / older runtimes
        vmem_bytes = 64 * 1024 * 1024
    groups = 2 if m >= 256 else 1   # megacore-friendly M split (harmless on 1-TC chips)
    budget = vmem_bytes // 6        # per-step working set, well under the scoped limit
    # f32 bytes per padded column for the fused chain: double-buffered input and
    # output plus (conservatively) every intermediate activation live at once.
    per_col = 4 * (2 * d_in + 2 * units[-1] + 2 * sum(units))
    tm = budget // max(per_col, 1)
    tm = min(tm, 8192)
    tm = min(tm, _round_up(-(-m // groups), 128))   # don't over-pad small M
    tm = max(128, (tm // 128) * 128)
    steps = -(-m // (groups * tm))
    m_pad = groups * steps * tm
    vmem_limit = int(min(vmem_bytes // 2, 100 * 1024 * 1024))
    return tm, groups, steps, m_pad, vmem_limit


def _flatten_chain(chain):
    """chain: list of (w, b, scale|None, shift|None, relu) -> (plan, flat operand list)."""
    plan, ops = [], []
    for (w, b, scale, shift, relu) in chain:
        has_bn = scale is not None
        plan.append((has_bn, relu))
        ops.extend([w, b])
        if has_bn:
            ops.extend([scale, shift])
    return tuple(plan), ops


def _run_chain(h, prefs, plan):
    """Apply the fused layer chain to the (C, tm) tile h using params in prefs."""
    idx = 0
    for (has_bn, relu) in plan:
        w = prefs[idx][...]
        b = prefs[idx + 1][...]
        idx += 2
        z = jnp.dot(w, h, preferred_element_type=jnp.float32) + b
        if has_bn:
            z = z * prefs[idx][...] + prefs[idx + 1][...]
            idx += 2
        if relu:
            z = jnp.maximum(z, 0.0)
        h = z
    return h


# ---------------------------------------------------------------------------
# Kernel 1 (one per BN layer): per-channel sum / sum-of-squares of the chained
# pre-activation z.  z is recomputed from x (cheap re-read) and never hits HBM.
# ---------------------------------------------------------------------------
def _chain_stats_kernel(x_ref, *refs, plan, tm, steps, m_valid, needs_mask):
    sum_ref, sq_ref = refs[-2], refs[-1]
    prefs = refs[:-2]
    g = pl.program_id(0)
    j = pl.program_id(1)

    @pl.when(j == 0)
    def _():
        sum_ref[...] = jnp.zeros_like(sum_ref)
        sq_ref[...] = jnp.zeros_like(sq_ref)

    h = _run_chain(x_ref[...], prefs, plan)
    if needs_mask:  # compile-time: only emitted when M was padded
        col0 = (g * steps + j) * tm
        cols = col0 + jax.lax.broadcasted_iota(jnp.int32, (1, tm), 1)
        h = jnp.where(cols < m_valid, h, 0.0)
    hsq = h * h

    # lane-partial accumulation (no cross-lane reduce, single ref read-modify-write)
    ps = h[:, 0:128]
    pq = hsq[:, 0:128]
    for k in range(1, tm // 128):
        lo = k * 128
        ps = ps + h[:, lo:lo + 128]
        pq = pq + hsq[:, lo:lo + 128]
    sum_ref[...] += ps
    sq_ref[...] += pq


def chain_channel_stats(x_t, chain_ops, plan, u_last, *, m_valid, tm, groups, steps,
                        vmem_limit):
    """x_t: (D, M_pad).  Returns per-channel (sum, sumsq) of the chain's final z
    over the m_valid real columns."""
    d, _ = x_t.shape
    needs_mask = x_t.shape[1] != m_valid
    kernel = functools.partial(_chain_stats_kernel, plan=plan, tm=tm, steps=steps,
                               m_valid=m_valid, needs_mask=needs_mask)
    const = lambda *_: (0, 0)
    in_specs = [pl.BlockSpec((d, tm), lambda g, j: (0, g * steps + j))]
    in_specs += [pl.BlockSpec(p.shape, const) for p in chain_ops]
    s_p, sq_p = pl.pallas_call(
        kernel,
        out_shape=(
            jax.ShapeDtypeStruct((u_last, groups * 128), jnp.float32),
            jax.ShapeDtypeStruct((u_last, groups * 128), jnp.float32),
        ),
        grid_spec=pltpu.PrefetchScalarGridSpec(
            num_scalar_prefetch=0,
            grid=(groups, steps),
            in_specs=in_specs,
            out_specs=(
                pl.BlockSpec((u_last, 128), lambda g, j: (0, g)),
                pl.BlockSpec((u_last, 128), lambda g, j: (0, g)),
            ),
        ),
        compiler_params=pltpu.CompilerParams(
            dimension_semantics=("parallel", "arbitrary"),
            vmem_limit_bytes=vmem_limit,
        ),
    )(x_t, *chain_ops)
    return s_p.sum(axis=1), sq_p.sum(axis=1)


# ---------------------------------------------------------------------------
# Kernel 2 (once per forward): fully fused layer chain
#   per layer: 1x1 conv (+ optional folded BN scale/shift) (+ optional ReLU),
# writing only the final layer's activation, lane-dense.
# ---------------------------------------------------------------------------
def _chain_apply_kernel(x_ref, *refs, plan):
    o_ref = refs[-1]
    prefs = refs[:-1]
    h = _run_chain(x_ref[...], prefs, plan)
    o_ref[...] = h.astype(o_ref.dtype)


def chain_apply(x_t, chain_ops, plan, u_last, *, tm, vmem_limit):
    """x_t: (D, M_pad) -> (U_last, M_pad), channels-first / lane-dense."""
    d, m_pad = x_t.shape
    kernel = functools.partial(_chain_apply_kernel, plan=plan)
    const = lambda *_: (0, 0)
    in_specs = [pl.BlockSpec((d, tm), lambda j: (0, j))]
    in_specs += [pl.BlockSpec(p.shape, const) for p in chain_ops]
    return pl.pallas_call(
        kernel,
        out_shape=jax.ShapeDtypeStruct((u_last, m_pad), jnp.float32),
        grid_spec=pltpu.PrefetchScalarGridSpec(
            num_scalar_prefetch=0,
            grid=(m_pad // tm,),
            in_specs=in_specs,
            out_specs=pl.BlockSpec((u_last, tm), lambda j: (0, j)),
        ),
        compiler_params=pltpu.CompilerParams(
            dimension_semantics=("parallel",),
            vmem_limit_bytes=vmem_limit,
        ),
    )(x_t, *chain_ops)


# ---------------------------------------------------------------------------
# FC module (JAX / Pallas port of the PyTorch FC in GMAN.py)
# ---------------------------------------------------------------------------
class FC:
    def __init__(self, input_dims, units, activations, bn, bn_decay, use_bias=True, key=None):
        if isinstance(units, int):
            units, activations = [units], [activations]
        elif isinstance(units, tuple):
            units, activations = list(units), list(activations)
        assert isinstance(units, list)
        for act in activations:
            assert act in (None, "relu", "ReLU"), (
                f"unsupported activation {act!r}: only ReLU / None are supported")
        self.input_dims = input_dims
        self.units = units
        self.activations = activations
        self.bn = bn
        # TODO(synk): bn_decay / running mean-var are not updated; forward matches
        # PyTorch training-mode (batch statistics) BatchNorm only.
        self.bn_decay = bn_decay
        self.use_bias = use_bias
        self.eps = 1e-3

        key = jax.random.PRNGKey(0) if key is None else key
        self.params = []
        in_dim = input_dims
        for num_unit in units:
            key, wkey = jax.random.split(key)
            # nn.init.xavier_normal_ on Conv2d weight (out, in, 1, 1)
            std = (2.0 / (in_dim + num_unit)) ** 0.5
            w = jax.random.normal(wkey, (num_unit, in_dim), dtype=jnp.float32) * std
            # nn.init.constant_(bias, 0); with use_bias=False a zero bias is identical.
            b = jnp.zeros((num_unit, 1), jnp.float32)
            gamma = jnp.ones((num_unit,), jnp.float32)     # BatchNorm2d affine defaults
            beta = jnp.zeros((num_unit,), jnp.float32)
            self.params.append((w, b, gamma, beta))
            in_dim = num_unit

    def __call__(self, x):
        b_, t_, n_, d_ = x.shape
        assert d_ == self.input_dims
        m = b_ * t_ * n_

        # channels-first / lane-dense layout: (C, M) with M on the 128-lane axis
        h = jnp.transpose(x.reshape(m, d_).astype(jnp.float32))  # (D, M)

        tm, groups, steps, m_pad, vmem_limit = _geometry(m, d_, self.units)
        if m_pad > m:
            h = jnp.pad(h, ((0, 0), (0, m_pad - m)))

        # Build the fused chain.  Each BN layer needs one stats pass over x (the
        # chain up to its pre-activation is recomputed there — cheap, the whole
        # stack is memory-bound); intermediate activations never hit HBM.
        chain = []  # (w, b, scale|None, shift|None, relu)
        for (w, bias, gamma, beta), act in zip(self.params, self.activations):
            relu = act is not None
            if relu and self.bn:
                plan, ops = _flatten_chain(chain + [(w, bias, None, None, False)])
                u = w.shape[0]
                s, sq = chain_channel_stats(h, ops, plan, u, m_valid=m, tm=tm,
                                            groups=groups, steps=steps,
                                            vmem_limit=vmem_limit)
                mean = s / m
                var = jnp.maximum(sq / m - mean * mean, 0.0)   # guard f32 cancellation
                scale = gamma * jax.lax.rsqrt(var + self.eps)
                shift = beta - mean * scale
                chain.append((w, bias, scale[:, None], shift[:, None], True))
            else:
                chain.append((w, bias, None, None, relu))

        plan, ops = _flatten_chain(chain)
        y = chain_apply(h, ops, plan, self.units[-1], tm=tm, vmem_limit=vmem_limit)

        out = jnp.transpose(y[:, :m]).reshape(b_, t_, n_, self.units[-1])
        return out


if __name__ == "__main__":
    B, T, N, D = 2, 8, 16, 4
    key = jax.random.PRNGKey(0)
    kx, kp = jax.random.split(key)
    x = jax.random.normal(kx, (B, T, N, D), dtype=jnp.float32)

    fc = FC(input_dims=D, units=[32, 16], activations=["relu", None],
            bn=True, bn_decay=0.1, use_bias=True, key=kp)
    out = jax.block_until_ready(fc(x))
    assert out.shape == (B, T, N, 16)
    assert bool(jnp.all(jnp.isfinite(out)))

    # pure-JAX reference (training-mode BatchNorm, eps=1e-3) for a numerical sanity check
    h_ref = x.reshape(B * T * N, D)
    for (w, bias, gamma, beta), act in zip(fc.params, fc.activations):
        z = h_ref @ w.T + bias.reshape(1, -1)
        if act is not None and fc.bn:
            mu = z.mean(axis=0)
            var = z.var(axis=0)
            z = (z - mu) * jax.lax.rsqrt(var + fc.eps) * gamma + beta
        if act is not None:
            z = jnp.maximum(z, 0.0)
        h_ref = z
    ref = h_ref.reshape(B, T, N, -1)
    assert jnp.allclose(out, ref, atol=1e-2, rtol=1e-2), float(jnp.abs(out - ref).max())

    print("KERNEL_OK")
</pallas_src>

<mosaic_0001>
module attributes {stable_mosaic.version = 11 : i64} {
  func.func @_chain_stats_kernel(%arg0: i32, %arg1: i32, %arg2: memref<4x128xf32, #tpu.memory_space<vmem>>, %arg3: memref<32x4xf32, #tpu.memory_space<vmem>>, %arg4: memref<32x1xf32, #tpu.memory_space<vmem>>, %arg5: memref<32x128xf32, #tpu.memory_space<vmem>>, %arg6: memref<32x128xf32, #tpu.memory_space<vmem>>) attributes {dimension_semantics = [#tpu.dimension_semantics<parallel>, #tpu.dimension_semantics<arbitrary>], iteration_bounds = array<i64: 2, 1>, scalar_prefetch = 0 : i64, scratch_operands = 0 : i64, tpu.core_type = #tpu.core_type<tc>, window_params = [{transform_indices = @transform_0, window_bounds = array<i64: 4, 128>}, {pipeline_mode = #tpu.pipeline_mode<synchronous>, transform_indices = @transform_1, window_bounds = array<i64: 32, 4>}, {pipeline_mode = #tpu.pipeline_mode<synchronous>, transform_indices = @transform_2, window_bounds = array<i64: 32, 1>}, {transform_indices = @transform_3, window_bounds = array<i64: 32, 128>}, {transform_indices = @transform_4, window_bounds = array<i64: 32, 128>}]} {
    %c0_i32 = arith.constant 0 : i32
    %0 = arith.cmpi eq, %arg1, %c0_i32 : i32
    %1 = arith.extui %0 : i1 to i32
    %c0_i32_0 = arith.constant 0 : i32
    %2 = arith.cmpi ne, %1, %c0_i32_0 : i32
    scf.if %2 {
      %cst_14 = arith.constant 0.000000e+00 : f32
      %16 = vector.broadcast %cst_14 : f32 to vector<32x128xf32>
      %c0_15 = arith.constant 0 : index
      %c0_16 = arith.constant 0 : index
      %17 = vector.load %arg5[%c0_15, %c0_16] : memref<32x128xf32, #tpu.memory_space<vmem>>, vector<32x128xf32>
      tpu.vector_store %arg5[%c0_15, %c0_16], %16 {strides = array<i32>} : memref<32x128xf32, #tpu.memory_space<vmem>>, vector<32x128xf32>,
      %cst_17 = arith.constant 0.000000e+00 : f32
      %18 = vector.broadcast %cst_17 : f32 to vector<32x128xf32>
      %c0_18 = arith.constant 0 : index
      %c0_19 = arith.constant 0 : index
      %19 = vector.load %arg6[%c0_18, %c0_19] : memref<32x128xf32, #tpu.memory_space<vmem>>, vector<32x128xf32>
      tpu.vector_store %arg6[%c0_18, %c0_19], %18 {strides = array<i32>} : memref<32x128xf32, #tpu.memory_space<vmem>>, vector<32x128xf32>,
    } else {
    }
    %c0 = arith.constant 0 : index
    %c0_1 = arith.constant 0 : index
    %3 = vector.load %arg2[%c0, %c0_1] : memref<4x128xf32, #tpu.memory_space<vmem>>, vector<4x128xf32>
    %c0_2 = arith.constant 0 : index
    %c0_3 = arith.constant 0 : index
    %4 = vector.load %arg3[%c0_2, %c0_3] : memref<32x4xf32, #tpu.memory_space<vmem>>, vector<32x4xf32>
    %c0_4 = arith.constant 0 : index
    %c0_5 = arith.constant 0 : index
    %5 = vector.load %arg4[%c0_4, %c0_5] : memref<32x1xf32, #tpu.memory_space<vmem>>, vector<32x1xf32>
    %cst = arith.constant dense<0.000000e+00> : vector<32x128xf32>
    %6 = tpu.matmul %4, %3, %cst {dimension_numbers = #tpu.dot_dimension_numbers<[1], [0], [0], [1], [0, 0, 1, 1], [], []>} : vector<32x4xf32>, vector<4x128xf32>, vector<32x128xf32> -> vector<32x128xf32>
    %7 = vector.broadcast %5 : vector<32x1xf32> to vector<32x128xf32>
    %8 = arith.addf %6, %7 : vector<32x128xf32>
    %9 = arith.mulf %8, %8 : vector<32x128xf32>
    %c0_6 = arith.constant 0 : index
    %c0_7 = arith.constant 0 : index
    %10 = vector.load %arg5[%c0_6, %c0_7] : memref<32x128xf32, #tpu.memory_space<vmem>>, vector<32x128xf32>
    %11 = arith.addf %10, %8 : vector<32x128xf32>
    %c0_8 = arith.constant 0 : index
    %c0_9 = arith.constant 0 : index
    %12 = vector.load %arg5[%c0_8, %c0_9] : memref<32x128xf32, #tpu.memory_space<vmem>>, vector<32x128xf32>
    tpu.vector_store %arg5[%c0_8, %c0_9], %11 {strides = array<i32>} : memref<32x128xf32, #tpu.memory_space<vmem>>, vector<32x128xf32>,
    %c0_10 = arith.constant 0 : index
    %c0_11 = arith.constant 0 : index
    %13 = vector.load %arg6[%c0_10, %c0_11] : memref<32x128xf32, #tpu.memory_space<vmem>>, vector<32x128xf32>
    %14 = arith.addf %13, %9 : vector<32x128xf32>
    %c0_12 = arith.constant 0 : index
    %c0_13 = arith.constant 0 : index
    %15 = vector.load %arg6[%c0_12, %c0_13] : memref<32x128xf32, #tpu.memory_space<vmem>>, vector<32x128xf32>
    tpu.vector_store %arg6[%c0_12, %c0_13], %14 {strides = array<i32>} : memref<32x128xf32, #tpu.memory_space<vmem>>, vector<32x128xf32>,
    return
  }
  func.func @transform_0(%arg0: i32, %arg1: i32) -> (i32, i32) {
    %c1_i32 = arith.constant 1 : i32
    %0 = arith.muli %arg0, %c1_i32 : i32
    %1 = arith.addi %0, %arg1 : i32
    %c0_i32 = arith.constant 0 : i32
    %c0_i32_0 = arith.constant 0 : i32
    return %c0_i32, %1 : i32, i32
  }
  func.func @transform_1(%arg0: i32, %arg1: i32) -> (i32, i32) {
    %c0_i32 = arith.constant 0 : i32
    %c0_i32_0 = arith.constant 0 : i32
    %c0_i32_1 = arith.constant 0 : i32
    return %c0_i32, %c0_i32_0 : i32, i32
  }
  func.func @transform_2(%arg0: i32, %arg1: i32) -> (i32, i32) {
    %c0_i32 = arith.constant 0 : i32
    %c0_i32_0 = arith.constant 0 : i32
    %c0_i32_1 = arith.constant 0 : i32
    return %c0_i32, %c0_i32_0 : i32, i32
  }
  func.func @transform_3(%arg0: i32, %arg1: i32) -> (i32, i32) {
    %c0_i32 = arith.constant 0 : i32
    %c0_i32_0 = arith.constant 0 : i32
    return %c0_i32, %arg0 : i32, i32
  }
  func.func @transform_4(%arg0: i32, %arg1: i32) -> (i32, i32) {
    %c0_i32 = arith.constant 0 : i32
    %c0_i32_0 = arith.constant 0 : i32
    return %c0_i32, %arg0 : i32, i32
  }
}

</mosaic_0001>

<bundles_post_ra>
// kernel: tpu_custom_call.1
= control target key start
LH: loop header
LB: loop body
LE: loop exit
PB: predicated region body
PF: predicated region fallthrough
CT: control target
= control target key end

     0   :  { %10 = vsyncpa [#allocation3], 0  ;;  %s955_s0 = inlined_call_operand.vmem [shape: f32[4,256], index: 0, kind: input, shape index: {}]   ;;  %s956_s1 = inlined_call_operand.vmem [shape: f32[32,4], index: 1, kind: input, shape index: {}]   ;;  %s957_s2 = inlined_call_operand.vmem [shape: f32[32,1], index: 2, kind: input, shape index: {}]   ;;  %s958_s3 = inlined_call_operand.hbm [shape: f32[32,256], index: 3, kind: output, shape index: {0}]   ;;  %s959_s4 = inlined_call_operand.hbm [shape: f32[32,256], index: 4, kind: output, shape index: {1}]  }
   0x1   :  { %12 = vsyncpa [#allocation3 + $0x1], 0 }
   0x2   :  { %13 = vsyncpa [#allocation5], 0 }
   0x3   :  { %15 = vsyncpa [#allocation5 + $0x1], 0  ;;  %s769_s15 = smov 0   ;;  %s771_s16 = smov 0  }
   0x4   :  { %s773_s17 = smov 0   ;;  %s775_s18 = smov 0  }
   0x5   :  { %s777_s19 = smov 0   ;;  %s779_s20 = smov 0  }
   0x6 LB: > { %s529_s21 = sadd.s32 4294967295, %s736_s20   ;;  %s530_s22 = sadd.s32 4294967294, %s736_s20   ;;  %s736_s20 = sphi %s779_s20, %s21_s20   ;;  %s732_s19 = sphi %s777_s19, %s966_s19   ;;  %s728_s18 = sphi %s775_s18, %s965_s18   ;;  %s724_s17 = sphi %s773_s17, %s964_s17   ;;  %s720_s16 = sphi %s771_s16, %s963_s16   ;;  %s716_s15 = sphi %s769_s15, %s962_s15  }
   0x7   : > { %s33_s23 = sadd.s32 1, %s732_s19  ;;  %s110_s24 = sadd.s32 1, %s724_s17 }
   0x8   : > { %p35_p0 = scmp.ge.s32.totalorder %s33_s23, 2  ;;  %p120_p1 = scmp.ne.s32.totalorder %s724_s17, %s720_s16 }
   0x9   : > { %p121_p2 = scmp.eq.s32.totalorder %s529_s21, 1  ;;  %p126_p3 = scmp.ne.s32.totalorder %s720_s16, %s716_s15 }
   0xa   : > { %s968_s23 = smov (%p35_p0, %s33_s23), 0  ;;  %p127_p5 = scmp.eq.s32.totalorder %s530_s22, 1 }
   0xb   : > { %p809_p4 = por %p121_p2, %p120_p1  ;;  %s107_s26 = ssub.s32 %s732_s19, %s968_s23 }
   0xc   : > { %p533_p6 = scmp.ge.s32.totalorder %s736_s20, 1  ;;  %p108_p7 = scmp.eq.s32.totalorder %s107_s26, 0 }
   0xd   : > { %p816_p8 = por %p127_p5, %p126_p3  ;;  %p186_p9 = scmp.lt.s32.totalorder %s736_s20, 3 }
   0xe   : > { %s822_s28 = scalar_select %p108_p7, %s724_s17, %s110_s24  }
   0xf   : > { %p187_p10 = pnand %p533_p6, %p186_p9 }
  0x10   : > { %p218_p11 = scmp.lt.s32.totalorder (!%p187_p10), %s728_s18, 1  ;;  %s858_s8 = sand.u32 (!%p187_p10), 1, %s720_s16  }
  0x11   : > { %190 = sbr.rel (%p187_p10) target bundleno = 263 (0x107), region = 32  ;;  %s534_s9 = sshll.u32 (!%p187_p10), %s858_s8, 5 }
  0x12   : > { %s544_s10 = sshll.u32 (!%p187_p10), %s728_s18, 7  ;;  %s395_s30 = scalar_lea.sflag (!%p187_p10), [#allocation3], %s858_s8 }
  0x13   : > { %s877_s29 = scalar_lea.hbm (!%p187_p10), %s959_s4, %s544_s10  ;;  %s739_s6 = smov (!%p187_p10), [#allocation2]  }
  0x14   : > { %s634_s7 = sshll.u32 (!%p187_p10), %s739_s6, 4  ;;  %s635_s7 = int_to_ptr.vmem [resolvable:$false] %s634_s7 }
  0x16   : > { %v236_v0 = vld [vmem:[%s956_s1] sm:$0xff]  ;;  %vm264_vm0 = vcmask 31744   ;;  %v238_v1 = vld [vmem:[%s956_s1 + $0x10] sm:$0xff]  ;;  %s219_s11 = scalar_select %p218_p11, %s728_s18, 1  ;;  %v738_v4 = vmov 0   ;;  %vm277_vm1 = vcmask 1043456  }
  0x17   : > { %555 = vmatprep.mubr.msk.f32.mxu0 %vm264_vm0, %v236_v0  ;;  %558 = vmatprep.mubr.msk.f32.mxu1 %vm264_vm0, %v238_v1  ;;  %v242_v2 = vld [vmem:[%s957_s2 + $0x10] sm:$0xff]  ;;  %v240_v3 = vld [vmem:[%s957_s2] sm:$0xff]  ;;  %v237_v6 = vld [vmem:[%s956_s1 + $0x8] sm:$0xff]  ;;  %s869_s18 = scalar_lea.vmem [#allocation4], %s534_s9 }
  0x18   : > { %629 = vset.pattern.permute.xlu1 %v738_v4  ;;  %628 = vset.pattern.permute.xlu0 %v738_v4  ;;  %s536_s12 = sshll.u32 %s219_s11, 2  ;;  %v239_v7 = vld [vmem:[%s956_s1 + $0x18] sm:$0xff]  ;;  %v241_v9 = vld [vmem:[%s957_s2 + $0x8] sm:$0xff]  ;;  %s209_s11 = scalar_lea.vmem [#allocation2], %s534_s9 }
  0x19   : > { %256 = vperm.xlu1 %629, %v242_v2   ;;  %246 = vperm.xlu0 %628, %v240_v3   ;;  %s221_s21 = scalar_lea.vmem %s955_s0, %s536_s12  ;;  %v243_v8 = vld [vmem:[%s957_s2 + $0x18] sm:$0xff]  ;;  %s412_s12 = sshll.u32 %s209_s11, 4  ;;  %s867_s12 = int_to_ptr.vmem [resolvable:$true] %s412_s12 }
  0x1a   : > { %v235_v5 = vld [vmem:[%s221_s21] sm:$0xf]  ;;  %s865_s21 = scalar_lea.hbm %s958_s3, %s544_s10  ;;  %s427_s22 = sshll.u32 %s869_s18, 4  ;;  %s879_s22 = int_to_ptr.vmem [resolvable:$true] %s427_s22 }
  0x1b   : > { %553 = vmatprep.subr.msk.mxu0 %vm277_vm1, %v235_v5  ;;  %561 = vmatprep.subr.msk.mxu1 %vm277_vm1, %v235_v5  ;;  %s630_s5 = scalar_lea.vmem %s867_s12, 512  ;;  %s636_s9 = scalar_lea.vmem %s635_s7, 1024 }
  0x1c   : > { %554 = vmatpush3.msk.msra.mxu0 %vm277_vm1, %v235_v5  ;;  %562 = vmatpush3.msk.msra.mxu1 %vm277_vm1, %v235_v5  ;;  %p631_p12 = scmp.ne.s32.totalorder %s867_s12, %s630_s5  ;;  %p637_p1 = scmp.lt.s32.totalorder %s867_s12, %s635_s7 }
  0x1d   : > { %556 = vmatmul.mubr.msk.f32.vlgmr.msra.gmra.mxu0 %vm264_vm0, %v237_v6  ;;  %559 = vmatmul.mubr.msk.f32.vlgmr.msra.gmra.mxu1 %vm264_vm0, %v239_v7  ;;  %p638_p2 = scmp.lt.s32.totalorder %s636_s9, %s630_s5 }
  0x1e   : > { %261 = vperm.xlu1 %629, %v243_v8   ;;  %251 = vperm.xlu0 %628, %v241_v9   ;;  %p632_p13 = pnand %p631_p12, %p809_p4 }
  0x1f   : > { %p639_p3 = por %p638_p2, %p637_p1 }
  0x20   : > { %p633_p0 = pneg %p632_p13 }
  0x22   : > { %p640_p5 = pnand %p639_p3, %p633_p0 }
  0x94   : > { %v257_v10 = vpop.permute.xlu1 %256  ;;  %v247_v11 = vpop.permute.xlu0 %246 }
  0x99   : > { %v262_v12 = vpop.permute.xlu1 %261  ;;  %v252_v13 = vpop.permute.xlu0 %251 }
  0xdd   : > { %v557_v14 = vpop.f32.mrf.mxu0  ;;  %v560_v15 = vpop.f32.mrf.mxu1 }
  0xde   : > { %v353_v16 = vadd.f32 %v557_v14, %v252_v13  ;;  %v363_v17 = vadd.f32 %v560_v15, %v262_v12 }
  0xdf   : > { %v347_v18 = vpop.f32.mrf.mxu0  ;;  %v357_v19 = vpop.f32.mrf.mxu1 }
  0xe0   : > { %v367_v20 = vmul.f32 %v353_v16, %v353_v16  ;;  %v369_v21 = vmul.f32 %v363_v17, %v363_v17  ;;  %v348_v22 = vadd.f32 %v347_v18, %v247_v11  ;;  %v358_v23 = vadd.f32 %v357_v19, %v257_v10  ;;  %379 = vst [vmem:[%s209_s11 + $0x8] sm:$0xff] %v353_v16 }
  0xe1   : > { %381 = vst [vmem:[%s209_s11 + $0x18] sm:$0xff] %v363_v17 }
  0xe2   : > { %v366_v24 = vmul.f32 %v348_v22, %v348_v22  ;;  %v368_v25 = vmul.f32 %v358_v23, %v358_v23  ;;  %391 = vst [vmem:[%s869_s18 + $0x8] sm:$0xff] %v367_v20  ;;  %393 = vst [vmem:[%s869_s18 + $0x18] sm:$0xff] %v369_v21 }
  0xe3   : > { %378 = vst [vmem:[%s209_s11] sm:$0xff] %v348_v22  ;;  %380 = vst [vmem:[%s209_s11 + $0x10] sm:$0xff] %v358_v23 }
  0xe4   : > { %643 = shalt.err (!%p640_p5)
}
  0xe5   : > { %s644_s10 = scalar_lea.hbm %s865_s21, 512  ;;  %s648_s14 = scalar_lea.hbm %s958_s3, 1024 }
  0xe6   : > { %p645_p6 = scmp.ne.s32.totalorder %s865_s21, %s644_s10  ;;  %p649_p10 = scmp.lt.s32.totalorder %s865_s21, %s958_s3 }
  0xe7   : > { %p650_p11 = scmp.lt.s32.totalorder %s648_s14, %s644_s10 }
  0xe8   : > { %p646_p7 = pnand %p645_p6, %p809_p4 }
  0xe9   : > { %p651_p12 = por %p650_p11, %p649_p10 }
  0xea   : > { %p647_p9 = pneg %p646_p7 }
  0xec   : > { %p652_p13 = pnand %p651_p12, %p647_p9 }
  0xee   : > { %655 = shalt.err (!%p652_p13)
}
  0xef   : > { %s740_s5 = smov 128   ;;  %s741_s6 = smov 256   ;;  %390 = vst [vmem:[%s869_s18] sm:$0xff] %v366_v24  ;;  %392 = vst [vmem:[%s869_s18 + $0x10] sm:$0xff] %v368_v25 }
  0xf0   : > { %s742_s7 = smov 8   ;;  %s400_s9 = scalar_lea.sflag [#allocation5], %s858_s8 }
  0xf1   : > { %563 = dma.vmem_to_hbm [thread:$0]  (%p809_p4), %s867_s12, 512, %s865_s21, %s395_s30, %s740_s5, %s741_s6, %s742_s7  }
  0xf2   : > { %s656_s10 = scalar_lea.vmem %s879_s22, 512  ;;  %s743_s11 = smov [#allocation4]  }
  0xf3   : > { %p657_p0 = scmp.ne.s32.totalorder %s879_s22, %s656_s10  ;;  %s660_s13 = sshll.u32 %s743_s11, 4  ;;  %s661_s13 = int_to_ptr.vmem [resolvable:$false] %s660_s13 }
  0xf4   : > { %s662_s14 = scalar_lea.vmem %s661_s13, 1024  ;;  %p663_p3 = scmp.lt.s32.totalorder %s879_s22, %s661_s13 }
  0xf5   : > { %p658_p1 = pnand %p657_p0, %p809_p4  ;;  %p664_p5 = scmp.lt.s32.totalorder %s662_s14, %s656_s10 }
  0xf7   : > { %p659_p2 = pneg %p658_p1  ;;  %p665_p6 = por %p664_p5, %p663_p3 }
  0xf9   : > { %p666_p7 = pnand %p665_p6, %p659_p2 }
  0xfb   : > { %669 = shalt.err (!%p666_p7)
}
  0xfc   : > { %s670_s12 = scalar_lea.hbm %s877_s29, 512  ;;  %s674_s18 = scalar_lea.hbm %s959_s4, 1024 }
  0xfd   : > { %p671_p9 = scmp.ne.s32.totalorder %s877_s29, %s670_s12  ;;  %p675_p12 = scmp.lt.s32.totalorder %s877_s29, %s959_s4 }
  0xfe   : > { %p676_p13 = scmp.lt.s32.totalorder %s674_s18, %s670_s12 }
  0xff   : > { %p672_p10 = pnand %p671_p9, %p809_p4 }
 0x100   : > { %p677_p0 = por %p676_p13, %p675_p12 }
 0x101   : > { %p673_p11 = pneg %p672_p10 }
 0x103   : > { %p678_p1 = pnand %p677_p0, %p673_p11 }
 0x105   : > { %681 = shalt.err (!%p678_p1)
}
 0x106   : > { %564 = dma.vmem_to_hbm [thread:$0]  (%p809_p4), %s879_s22, 512, %s877_s29, %s400_s9, %s740_s5, %s741_s6, %s742_s7  }
 0x107 PF: > { %p574_p2 = scmp.ge.s32.totalorder %s736_s20, 2  ;;  %s442_s26 = sand.u32 1, %s716_s15  }
 0x108   : > { %s443_s10 = scalar_lea.sflag [#allocation3], %s442_s26 }
 0x109   : > { %p568_p3 = pnand %p574_p2, %p816_p8 }
 0x10b   : > { %p569_p5 = pneg %p568_p3 }
 0x10d   : > { %707 = dma.done.wait (%p569_p5), %s443_s10, 512  }
 0x10e   : > { %709 = vsyncadd (%p569_p5), %s443_s10, 4294966784  ;;  %s452_s11 = scalar_lea.sflag [#allocation5], %s442_s26 }
 0x10f   : > { %711 = dma.done.wait (%p569_p5), %s452_s11, 512  }
 0x110   : > { %713 = vsyncadd (%p569_p5), %s452_s11, 4294966784  ;;  %s21_s20 = sadd.s32 1, %s736_s20   ;;  %s962_s15 = smov %s720_s16 }
 0x111   : > { %p18_p6 = scmp.ge.s32.totalorder %s21_s20, 4   ;;  %s963_s16 = smov %s724_s17 }
 0x112   : > { %s964_s17 = smov %s822_s28  ;;  %s965_s18 = smov %s732_s19 }
 0x113   : > { %s966_s19 = smov %s968_s23  ;;  %20 = sbr.rel (!%p18_p6) target bundleno = 6 (0x6), region = 88 }
 0x118   :  { %457 = vsyncpa [#allocation3], 1 }
 0x119   :  { %459 = vsyncpa [#allocation3 + $0x1], 1 }
 0x11a   :  { %460 = vsyncpa [#allocation5], 1 }
 0x11b   :  { %462 = vsyncpa [#allocation5 + $0x1], 1 }

</bundles_post_ra>
